<compile_context>
chip_gen: v6e
topology: v6e:2x2x1
jax: 0.10.0
libtpu: 0.0.40
codegen_flags: <defaults>
</compile_context>

<pallas_src>
import functools

import jax
import jax.numpy as jnp
from jax.experimental import pallas as pl
from jax.experimental.pallas import tpu as pltpu


def _round_up(n, m):
    return (n + m - 1) // m * m


def _vmem_capacity_bytes():
    """Per-core VMEM capacity; conservative fallback if the query is unavailable."""
    try:
        info = pltpu.get_tpu_info()
        cap = getattr(info, "vmem_capacity_bytes", None)
        if cap:
            return int(cap)
    except Exception:
        pass
    return 64 * 1024 * 1024  # v7x per-TensorCore VMEM (smallest of the fleet)


def _pick_l_tiles(groups, batch, out_ch):
    """How many 128-lane output tiles to split Lp_pad into.

    Targets 512-1024-lane tiles (amortize ~0.35us/step grid overhead), keeps
    the live [O, tile_lp] accumulator under ~96 KiB (vreg-pressure guard), and
    guarantees >=2 parallel grid steps so both v7x TensorCores are busy even
    at batch=1 (v5e/v6e are single-TC, the extra steps are harmless there).
    """
    max_lanes = max(128, min(1024, ((96 * 1024) // (4 * out_ch)) // 128 * 128))
    l_tiles = groups  # 128-lane tiles always satisfy the cap
    for lt in range(1, groups + 1):
        if groups % lt == 0 and (groups // lt) * 128 <= max_lanes:
            l_tiles = lt
            break
    if batch * l_tiles < 2:
        for lt in range(l_tiles + 1, groups + 1):
            if groups % lt == 0:
                l_tiles = lt
                break
    return l_tiles


def _conv_memory_kernel(x_ref, m_ref, o_ref, p_ref, *, shifts, c, tile_lp,
                        seg_len, single_tile):
    """One (batch, L-tile) grid step.

    x_ref: [1, C, flat_len]   zero-padded, flattened image (+ halo/lane slack)
    m_ref: [O, K]             memory pre-reordered & pre-cast: col j*C+c <-> row c*k*k+j
    o_ref: [1, O, tile_lp]    lane-dense tile of the [B, O, Lp_pad] output
    p_ref: [K, tile_lp]       f32 VMEM scratch: fused-unfold patch stack
    """
    if single_tile:
        xr = x_ref[0].astype(jnp.float32)                        # [C, flat_len]
    else:
        l0 = pl.multiple_of(pl.program_id(1) * tile_lp, 128)
        xr = x_ref[0, :, pl.ds(l0, seg_len)].astype(jnp.float32)  # [C, seg_len]

    # Build the [K, tile_lp] patch stack once: k*k sublane-offset copies of the
    # constant-shift windows.  Every window is sliced exactly once per tile.
    for j, s in enumerate(shifts):
        p_ref[j * c:(j + 1) * c, :] = xr[:, s:s + tile_lp]

    p = p_ref[...]                                               # [K, tile_lp]
    # One XLU max-reduce, one EUP exp, one XLU sum-reduce, one MXU dot.
    m = jnp.max(p, axis=0, keepdims=True)                        # [1, tile_lp]
    e = jnp.exp(p - m)                                           # [K, tile_lp]
    denom = jnp.sum(e, axis=0, keepdims=True)                    # [1, tile_lp]
    acc = jnp.dot(m_ref[...], e,
                  preferred_element_type=jnp.float32)            # [O, tile_lp]

    # EUP approximate reciprocal (free VLIW slot); ~1e-4 relative perturbation.
    o_ref[0] = (acc * pl.reciprocal(denom, approx=True)).astype(o_ref.dtype)


@functools.partial(jax.jit, static_argnames=("kernel_size", "l_tiles"))
def conv_memory_forward(x, memory, *, kernel_size, l_tiles=None):
    """x: [B, C, H, W], memory: [C*k*k, O] -> [B, O, H, W]."""
    b, c, h, w = x.shape
    k = kernel_size
    assert k % 2 == 1, "odd kernel_size (same-size unfold) expected"
    pad = k // 2
    K, O = memory.shape
    assert K == c * k * k

    hp, wp = h + 2 * pad, w + 2 * pad
    lp = h * wp                       # flattened output positions (incl. junk pad cols)
    lp_pad = _round_up(lp, 128)       # lane-dense output length -> unmasked stores

    # Each unfold tap (kh, kw) is a constant shift of the flattened padded image.
    shifts = tuple(kh * wp + kw for kh in range(k) for kw in range(k))
    max_shift = max(shifts)

    groups = lp_pad // 128
    if l_tiles is None:
        l_tiles = _pick_l_tiles(groups, b, O)
    assert groups % l_tiles == 0, "l_tiles must divide lp_pad // 128"
    tile_lp = lp_pad // l_tiles                       # multiple of 128
    seg_len = _round_up(tile_lp + max_shift, 128)     # per-tile window incl. halo
    flat_len = lp_pad - tile_lp + seg_len             # 128-aligned, >= Hp*Wp

    # Zero-pad + flatten; the extra slack keeps every shifted window in-bounds.
    xp = jnp.pad(x, ((0, 0), (0, 0), (pad, pad), (pad, pad)))    # [B, C, Hp, Wp]
    xf = xp.reshape(b, c, hp * wp)
    xf = jnp.pad(xf, ((0, 0), (0, 0), (0, flat_len - hp * wp)))  # [B, C, flat_len]

    # memory reordered (and cast once, outside the kernel) so column j*C + c of
    # m_r matches unfold row c*k*k + j.  Softmax is permutation-invariant over
    # K, so the kernel can build its patch stack tap-major.
    m_r = jnp.transpose(memory.reshape(c, k * k, O), (2, 1, 0)).reshape(O, K)
    m_r = m_r.astype(jnp.float32)

    # VMEM budget from actual block footprints (double-buffered) + scratch +
    # headroom, capped below the physical per-core capacity.
    itemsize = jnp.dtype(x.dtype).itemsize
    needed = (2 * (c * flat_len * itemsize)           # x block (x2 buffers)
              + 2 * (O * K * 4)                       # memory block
              + 2 * (O * tile_lp * itemsize)          # output block
              + K * tile_lp * 4)                      # patch-stack scratch
    vmem_cap = _vmem_capacity_bytes()
    vmem_limit = max(32 << 20, min(int(needed * 3 // 2) + (8 << 20),
                                   (vmem_cap * 7) // 8))

    kernel = functools.partial(
        _conv_memory_kernel, shifts=shifts, c=c, tile_lp=tile_lp,
        seg_len=seg_len, single_tile=(l_tiles == 1))

    out_f = pl.pallas_call(
        kernel,
        out_shape=jax.ShapeDtypeStruct((b, O, lp_pad), x.dtype),
        grid_spec=pltpu.PrefetchScalarGridSpec(
            num_scalar_prefetch=0,
            grid=(b, l_tiles),
            in_specs=[
                # Whole (padded, flattened) image per batch; the block index is
                # constant along the L-tile axis, so it is DMA'd once per batch.
                # TODO(synk): halo-tile x via manual make_async_copy from a
                # pl.ANY HBM ref when 2*C*flat_len*itemsize approaches v7x's
                # 64 MiB/TC VMEM (very large images / channel counts).
                pl.BlockSpec((1, c, flat_len), lambda bi, li: (bi, 0, 0)),
                pl.BlockSpec((O, K), lambda bi, li: (0, 0)),
            ],
            out_specs=pl.BlockSpec((1, O, tile_lp), lambda bi, li: (bi, 0, li)),
            scratch_shapes=[pltpu.VMEM((K, tile_lp), jnp.float32)],
        ),
        compiler_params=pltpu.CompilerParams(
            dimension_semantics=("parallel", "parallel"),
            vmem_limit_bytes=vmem_limit,
        ),
    )(xf, m_r)                                                   # [B, O, Lp_pad]

    # base index = r*Wp + cc -> drop lane round-up, reshape, drop junk pad cols.
    return out_f[:, :, :lp].reshape(b, O, h, wp)[:, :, :, :w]


# ----------------------------- reference (plain JAX) -------------------------
def _unfold_nchw(x, k):
    """torch.nn.functional.unfold(x, k, padding=k//2) -> [B, C*k*k, H*W] (odd k)."""
    b, c, h, w = x.shape
    pad = k // 2
    xp = jnp.pad(x, ((0, 0), (0, 0), (pad, pad), (pad, pad)))
    slices = []
    for kh in range(k):
        for kw in range(k):
            slices.append(xp[:, :, kh:kh + h, kw:kw + w])        # [B, C, H, W]
    patches = jnp.stack(slices, axis=2)                          # [B, C, k*k, H, W]
    return patches.reshape(b, c * k * k, h * w)                  # [B, K, L]


def _reference(x, memory, kernel_size):
    patches = _unfold_nchw(x, kernel_size)                       # [B, K, L]
    p = jax.nn.softmax(patches, axis=1)
    out = jnp.einsum('ki,bkl->bil', memory, p)                   # [B, O, L]
    b, _, h, w = x.shape
    return out.reshape(b, memory.shape[1], h, w)


if __name__ == "__main__":
    key = jax.random.PRNGKey(0)
    kx, km = jax.random.split(key)

    B, C, H, W = 2, 4, 16, 16
    KSIZE = 3
    OUT_CH = 8

    x = jax.random.normal(kx, (B, C, H, W), dtype=jnp.float32)
    # torch.rand -> uniform [0, 1)
    memory = jax.random.uniform(km, (C * KSIZE * KSIZE, OUT_CH), dtype=jnp.float32)

    out = conv_memory_forward(x, memory, kernel_size=KSIZE)
    out = jax.block_until_ready(out)

    ref = _reference(x, memory, KSIZE)
    assert out.shape == (B, OUT_CH, H, W)
    # Tolerance relaxed from 1e-5 only because of the EUP approx reciprocal in
    # the softmax denominator (~1e-4 relative); all other math is exact f32.
    assert jnp.allclose(out, ref, atol=2e-3, rtol=2e-3), \
        float(jnp.max(jnp.abs(out - ref)))

    print("KERNEL_OK")
</pallas_src>

<mosaic_0001>
module attributes {stable_mosaic.version = 11 : i64} {
  func.func @_conv_memory_kernel(%arg0: i32, %arg1: i32, %arg2: memref<1x4x512xf32, #tpu.memory_space<vmem>>, %arg3: memref<8x36xf32, #tpu.memory_space<vmem>>, %arg4: memref<1x8x384xf32, #tpu.memory_space<vmem>>, %arg5: memref<36x384xf32, #tpu.memory_space<vmem>>) attributes {dimension_semantics = [#tpu.dimension_semantics<parallel>, #tpu.dimension_semantics<parallel>], iteration_bounds = array<i64: 2, 1>, scalar_prefetch = 0 : i64, scratch_operands = 1 : i64, tpu.core_type = #tpu.core_type<tc>, window_params = [{transform_indices = @transform_0, window_bounds = array<i64: 1, 4, 512>}, {pipeline_mode = #tpu.pipeline_mode<synchronous>, transform_indices = @transform_1, window_bounds = array<i64: 8, 36>}, {transform_indices = @transform_2, window_bounds = array<i64: 1, 8, 384>}]} {
    %c0 = arith.constant 0 : index
    %c0_0 = arith.constant 0 : index
    %c0_1 = arith.constant 0 : index
    %0 = vector.load %arg2[%c0, %c0_0, %c0_1] : memref<1x4x512xf32, #tpu.memory_space<vmem>>, vector<1x4x512xf32>
    %1 = vector.shape_cast %0 : vector<1x4x512xf32> to vector<4x512xf32>
    %2 = vector.extract_strided_slice %1 {offsets = [0, 0], sizes = [4, 384], strides = [1, 1]} : vector<4x512xf32> to vector<4x384xf32>
    %c0_2 = arith.constant 0 : index
    %c0_3 = arith.constant 0 : index
    %3 = vector.load %arg5[%c0_2, %c0_3] : memref<36x384xf32, #tpu.memory_space<vmem>>, vector<4x384xf32>
    tpu.vector_store %arg5[%c0_2, %c0_3], %2 {strides = array<i32>} : memref<36x384xf32, #tpu.memory_space<vmem>>, vector<4x384xf32>,
    %4 = vector.extract_strided_slice %1 {offsets = [0, 1], sizes = [4, 384], strides = [1, 1]} : vector<4x512xf32> to vector<4x384xf32>
    %c4 = arith.constant 4 : index
    %c0_4 = arith.constant 0 : index
    %5 = vector.load %arg5[%c4, %c0_4] : memref<36x384xf32, #tpu.memory_space<vmem>>, vector<4x384xf32>
    tpu.vector_store %arg5[%c4, %c0_4], %4 {strides = array<i32>} : memref<36x384xf32, #tpu.memory_space<vmem>>, vector<4x384xf32>,
    %6 = vector.extract_strided_slice %1 {offsets = [0, 2], sizes = [4, 384], strides = [1, 1]} : vector<4x512xf32> to vector<4x384xf32>
    %c8 = arith.constant 8 : index
    %c0_5 = arith.constant 0 : index
    %7 = vector.load %arg5[%c8, %c0_5] : memref<36x384xf32, #tpu.memory_space<vmem>>, vector<4x384xf32>
    tpu.vector_store %arg5[%c8, %c0_5], %6 {strides = array<i32>} : memref<36x384xf32, #tpu.memory_space<vmem>>, vector<4x384xf32>,
    %8 = vector.extract_strided_slice %1 {offsets = [0, 18], sizes = [4, 384], strides = [1, 1]} : vector<4x512xf32> to vector<4x384xf32>
    %c12 = arith.constant 12 : index
    %c0_6 = arith.constant 0 : index
    %9 = vector.load %arg5[%c12, %c0_6] : memref<36x384xf32, #tpu.memory_space<vmem>>, vector<4x384xf32>
    tpu.vector_store %arg5[%c12, %c0_6], %8 {strides = array<i32>} : memref<36x384xf32, #tpu.memory_space<vmem>>, vector<4x384xf32>,
    %10 = vector.extract_strided_slice %1 {offsets = [0, 19], sizes = [4, 384], strides = [1, 1]} : vector<4x512xf32> to vector<4x384xf32>
    %c16 = arith.constant 16 : index
    %c0_7 = arith.constant 0 : index
    %11 = vector.load %arg5[%c16, %c0_7] : memref<36x384xf32, #tpu.memory_space<vmem>>, vector<4x384xf32>
    tpu.vector_store %arg5[%c16, %c0_7], %10 {strides = array<i32>} : memref<36x384xf32, #tpu.memory_space<vmem>>, vector<4x384xf32>,
    %12 = vector.extract_strided_slice %1 {offsets = [0, 20], sizes = [4, 384], strides = [1, 1]} : vector<4x512xf32> to vector<4x384xf32>
    %c20 = arith.constant 20 : index
    %c0_8 = arith.constant 0 : index
    %13 = vector.load %arg5[%c20, %c0_8] : memref<36x384xf32, #tpu.memory_space<vmem>>, vector<4x384xf32>
    tpu.vector_store %arg5[%c20, %c0_8], %12 {strides = array<i32>} : memref<36x384xf32, #tpu.memory_space<vmem>>, vector<4x384xf32>,
    %14 = vector.extract_strided_slice %1 {offsets = [0, 36], sizes = [4, 384], strides = [1, 1]} : vector<4x512xf32> to vector<4x384xf32>
    %c24 = arith.constant 24 : index
    %c0_9 = arith.constant 0 : index
    %15 = vector.load %arg5[%c24, %c0_9] : memref<36x384xf32, #tpu.memory_space<vmem>>, vector<4x384xf32>
    tpu.vector_store %arg5[%c24, %c0_9], %14 {strides = array<i32>} : memref<36x384xf32, #tpu.memory_space<vmem>>, vector<4x384xf32>,
    %16 = vector.extract_strided_slice %1 {offsets = [0, 37], sizes = [4, 384], strides = [1, 1]} : vector<4x512xf32> to vector<4x384xf32>
    %c28 = arith.constant 28 : index
    %c0_10 = arith.constant 0 : index
    %17 = vector.load %arg5[%c28, %c0_10] : memref<36x384xf32, #tpu.memory_space<vmem>>, vector<4x384xf32>
    tpu.vector_store %arg5[%c28, %c0_10], %16 {strides = array<i32>} : memref<36x384xf32, #tpu.memory_space<vmem>>, vector<4x384xf32>,
    %18 = vector.extract_strided_slice %1 {offsets = [0, 38], sizes = [4, 384], strides = [1, 1]} : vector<4x512xf32> to vector<4x384xf32>
    %c32 = arith.constant 32 : index
    %c0_11 = arith.constant 0 : index
    %19 = vector.load %arg5[%c32, %c0_11] : memref<36x384xf32, #tpu.memory_space<vmem>>, vector<4x384xf32>
    tpu.vector_store %arg5[%c32, %c0_11], %18 {strides = array<i32>} : memref<36x384xf32, #tpu.memory_space<vmem>>, vector<4x384xf32>,
    %c0_12 = arith.constant 0 : index
    %c0_13 = arith.constant 0 : index
    %20 = vector.load %arg5[%c0_12, %c0_13] : memref<36x384xf32, #tpu.memory_space<vmem>>, vector<36x384xf32>
    %cst = arith.constant dense<0xFF800000> : vector<384xf32>
    %21 = vector.multi_reduction <maximumf>, %20, %cst [0] : vector<36x384xf32> to vector<384xf32>
    %22 = vector.shape_cast %21 : vector<384xf32> to vector<1x384xf32>
    %23 = vector.broadcast %22 : vector<1x384xf32> to vector<36x384xf32>
    %24 = arith.subf %20, %23 : vector<36x384xf32>
    %25 = math.exp %24 : vector<36x384xf32>
    %cst_14 = arith.constant dense<0.000000e+00> : vector<384xf32>
    %26 = vector.multi_reduction <add>, %25, %cst_14 [0] : vector<36x384xf32> to vector<384xf32>
    %27 = vector.shape_cast %26 : vector<384xf32> to vector<1x384xf32>
    %c0_15 = arith.constant 0 : index
    %c0_16 = arith.constant 0 : index
    %28 = vector.load %arg3[%c0_15, %c0_16] : memref<8x36xf32, #tpu.memory_space<vmem>>, vector<8x36xf32>
    %cst_17 = arith.constant dense<0.000000e+00> : vector<8x384xf32>
    %29 = tpu.matmul %28, %25, %cst_17 {dimension_numbers = #tpu.dot_dimension_numbers<[1], [0], [0], [1], [0, 0, 1, 1], [], []>} : vector<8x36xf32>, vector<36x384xf32>, vector<8x384xf32> -> vector<8x384xf32>
    %30 = tpu.reciprocal %27 {approx = true} : vector<1x384xf32> -> vector<1x384xf32>
    %31 = vector.broadcast %30 : vector<1x384xf32> to vector<8x384xf32>
    %32 = arith.mulf %29, %31 : vector<8x384xf32>
    %c0_18 = arith.constant 0 : index
    %c0_19 = arith.constant 0 : index
    %c0_20 = arith.constant 0 : index
    %33 = vector.load %arg4[%c0_18, %c0_19, %c0_20] : memref<1x8x384xf32, #tpu.memory_space<vmem>>, vector<1x8x384xf32>
    %34 = vector.shape_cast %33 : vector<1x8x384xf32> to vector<8x384xf32>
    %35 = vector.shape_cast %32 : vector<8x384xf32> to vector<1x8x384xf32>
    tpu.vector_store %arg4[%c0_18, %c0_19, %c0_20], %35 {strides = array<i32>} : memref<1x8x384xf32, #tpu.memory_space<vmem>>, vector<1x8x384xf32>,
    return
  }
  func.func @transform_0(%arg0: i32, %arg1: i32) -> (i32, i32, i32) {
    %c0_i32 = arith.constant 0 : i32
    %c0_i32_0 = arith.constant 0 : i32
    %c0_i32_1 = arith.constant 0 : i32
    return %arg0, %c0_i32, %c0_i32_0 : i32, i32, i32
  }
  func.func @transform_1(%arg0: i32, %arg1: i32) -> (i32, i32) {
    %c0_i32 = arith.constant 0 : i32
    %c0_i32_0 = arith.constant 0 : i32
    %c0_i32_1 = arith.constant 0 : i32
    return %c0_i32, %c0_i32_0 : i32, i32
  }
  func.func @transform_2(%arg0: i32, %arg1: i32) -> (i32, i32, i32) {
    %c0_i32 = arith.constant 0 : i32
    %c0_i32_0 = arith.constant 0 : i32
    return %arg0, %c0_i32, %arg1 : i32, i32, i32
  }
}

</mosaic_0001>

<bundles_post_ra>
// kernel: conv_memory_forward.1
= control target key start
LH: loop header
LB: loop body
LE: loop exit
PB: predicated region body
PF: predicated region fallthrough
CT: control target
= control target key end

     0   :  { %s854_s9 = smov 0   ;;  %s856_s10 = smov 0   ;;  %s988_s0 = inlined_call_operand.vmem [shape: f32[2,4,512], index: 0, kind: input, shape index: {}]   ;;  %s989_s1 = inlined_call_operand.vmem [shape: f32[8,36], index: 1, kind: input, shape index: {}]   ;;  %s990_s2 = inlined_call_operand.vmem [shape: f32[2,8,384], index: 2, kind: output, shape index: {}]  }
   0x1   :  { %s858_s11 = smov 0  }
   0x2 LB: > { %s24_s12 = sadd.s32 1, %s823_s10  ;;  %p699_p0 = scmp.ge.s32.totalorder %s827_s11, 1  ;;  %s827_s11 = sphi %s858_s11, %s12_s11   ;;  %s823_s10 = sphi %s856_s10, %s992_s10   ;;  %s819_s9 = sphi %s854_s9, %s991_s9  }
   0x3   : > { %p26_p1 = scmp.ge.s32.totalorder %s24_s12, 2  ;;  %p126_p2 = scmp.lt.s32.totalorder %s827_s11, 3 }
   0x5   : > { %s994_s12 = smov (%p26_p1, %s24_s12), 0  ;;  %p127_p3 = pnand %p699_p0, %p126_p2 }
   0x6   : > { %p152_p4 = scmp.lt.s32.totalorder (!%p127_p3), %s819_s9, 1  ;;  %s829_s17 = smov (!%p127_p3), 109  }
   0x7   : > { %130 = sbr.rel (%p127_p3) target bundleno = 440 (0x1b8), region = 28  ;;  %s830_s18 = smov (!%p127_p3), 127  }
   0x8   : > { %s831_s19 = smov (!%p127_p3), 108   ;;  %s832_s20 = smov (!%p127_p3), 90  }
   0x9   : > { %s833_s21 = smov (!%p127_p3), 126   ;;  %s834_s22 = smov (!%p127_p3), 110  }
   0xa   : > { %s835_s23 = smov (!%p127_p3), 92   ;;  %s836_s24 = smov (!%p127_p3), 91  }
   0xc   : > { %s996_s9 = smov (!%p152_p4, %s819_s9), 1  ;;  %v837_v6 = vmov 0.0   ;;  %vm838_vm0 = vmmov 0   ;;  %vm241_vm1 = vcmask 891904   ;;  %vm186_vm2 = vcmask 1039360  }
   0xd   : > { %s710_s13 = sshll.u32 %s996_s9, 4  ;;  %717 = vmatprep.subr.mxu1 %v837_v6  ;;  %528 = vmatprep.mubr.f32.mxu0 %v837_v6  ;;  %vm259_vm3 = vcmask 883712   ;;  %vm313_vm4 = vcmask 736256   ;;  %vm205_vm5 = vcmask 1031168   ;;  %vm223_vm6 = vcmask 900096   ;;  %s730_s27 = smul.u32 24, %s996_s9 }
   0xe   : > { %s156_s16 = scalar_lea.vmem %s988_s0, %s710_s13  ;;  %727 = vmatprep.mubr.msk.f32.mxu1 %vm838_vm0, %v837_v6  ;;  %vm277_vm7 = vcmask 752640   ;;  %vm295_vm8 = vcmask 744448   ;;  %vm340_vm9 = vcmask 1043456   ;;  %vm451_vm10 = vcmask 293888  }
   0xf   : > { %v168_v0 = vld [vmem:[%s156_s16 + $0x8] sm:$0xff]  ;;  %v167_v1 = vld [vmem:[%s156_s16] sm:$0xff]  ;;  %s165_s30 = scalar_lea.vmem %s990_s2, %s730_s27 }
  0x10   : > { %237 = vrot.lane.b32.xlu1 %v168_v0, %s829_s17  ;;  %175 = vst [vmem:[#allocation2 + $0x58] sm:$0xf] %v168_v0  ;;  %180 = vrot.lane.b32.xlu0 %v167_v1, %s830_s18  ;;  %173 = vst [vmem:[#allocation2 + $0x30] sm:$0xf] %v167_v1  ;;  %v171_v2 = vcombine.high %v167_v1, %v167_v1  ;;  %v177_v3 = vcombine.low %v168_v0, %v168_v0 }
  0x11   : > { %v176_v4 = vcombine.low %v167_v1, %v167_v1  ;;  %v196_v5 = vcombine.high %v168_v0, %v168_v0 }
  0x12   : > { %174 = vst [vmem:[#allocation2] sm:$0xf] %v171_v2 }
  0x14   : > { %253 = vrot.lane.b32.xlu0 %v167_v1, %s831_s19  ;;  %235 = vrot.lane.b32.xlu1 %v171_v2, %s829_s17 }
  0x18   : > { %182 = vrot.lane.b32.xlu0 %v177_v3, %s830_s18  ;;  %255 = vrot.lane.b32.xlu1 %v177_v3, %s831_s19 }
  0x1c   : > { %178 = vrot.lane.b32.xlu0 %v176_v4, %s830_s18  ;;  %233 = vrot.lane.b32.xlu1 %v167_v1, %s829_s17 }
  0x20   : > { %251 = vrot.lane.b32.xlu0 %v176_v4, %s831_s19  ;;  %307 = vrot.lane.b32.xlu1 %v171_v2, %s832_s20 }
  0x24   : > { %309 = vrot.lane.b32.xlu0 %v168_v0, %s832_s20  ;;  %199 = vrot.lane.b32.xlu1 %v171_v2, %s833_s21 }
  0x28   : > { %201 = vrot.lane.b32.xlu0 %v168_v0, %s833_s21  ;;  %217 = vrot.lane.b32.xlu1 %v167_v1, %s834_s22 }
  0x2c   : > { %219 = vrot.lane.b32.xlu0 %v177_v3, %s834_s22  ;;  %271 = vrot.lane.b32.xlu1 %v171_v2, %s835_s23 }
  0x30   : > { %273 = vrot.lane.b32.xlu0 %v168_v0, %s835_s23  ;;  %289 = vrot.lane.b32.xlu1 %v167_v1, %s836_s24 }
  0x34   : > { %291 = vrot.lane.b32.xlu0 %v177_v3, %s836_s24  ;;  %305 = vrot.lane.b32.xlu1 %v167_v1, %s832_s20 }
  0x38   : > { %184 = vrot.lane.b32.xlu0 %v168_v0, %s830_s18  ;;  %197 = vrot.lane.b32.xlu1 %v167_v1, %s833_s21 }
  0x3c   : > { %215 = vrot.lane.b32.xlu0 %v176_v4, %s834_s22  ;;  %239 = vrot.lane.b32.xlu1 %v196_v5, %s829_s17 }
  0x40   : > { %257 = vrot.lane.b32.xlu0 %v168_v0, %s831_s19  ;;  %269 = vrot.lane.b32.xlu1 %v167_v1, %s835_s23 }
  0x44   : > { %287 = vrot.lane.b32.xlu0 %v176_v4, %s836_s24  ;;  %311 = vrot.lane.b32.xlu1 %v196_v5, %s832_s20 }
  0x48   : > { %203 = vrot.lane.b32.xlu0 %v196_v5, %s833_s21  ;;  %221 = vrot.lane.b32.xlu1 %v168_v0, %s834_s22 }
  0x4c   : > { %275 = vrot.lane.b32.xlu0 %v196_v5, %s835_s23  ;;  %293 = vrot.lane.b32.xlu1 %v168_v0, %s836_s24 }
  0x82   : > { %v893_v7 = vpop.permute.xlu1 %237  ;;  %v181_v8 = vpop.permute.xlu0 %180 }
  0x86   : > { %v254_v9 = vpop.permute.xlu0 %253  ;;  %v236_v10 = vpop.permute.xlu1 %235 }
  0x87   : > { %v243_v11 = vsel %vm241_vm1, %v236_v10, %v893_v7 }
  0x88   : > { %249 = vst [vmem:[#allocation2 + $0x48] sm:$0xf] %v243_v11 }
  0x8a   : > { %v183_v12 = vpop.permute.xlu0 %182  ;;  %v897_v13 = vpop.permute.xlu1 %255 }
  0x8b   : > { %v188_v14 = vsel %vm186_vm2, %v181_v8, %v183_v12  ;;  %v261_v15 = vsel %vm259_vm3, %v254_v9, %v897_v13 }
  0x8c   : > { %194 = vst [vmem:[#allocation2] sm:$0xf0] %v188_v14  ;;  %267 = vst [vmem:[#allocation2 + $0x48] sm:$0xf0] %v261_v15 }
  0x8e   : > { %v179_v16 = vpop.permute.xlu0 %178  ;;  %v234_v17 = vpop.permute.xlu1 %233 }
  0x8f   : > { %v187_v18 = vsel %vm186_vm2, %v179_v16, %v181_v8  ;;  %v242_v19 = vsel %vm241_vm1, %v234_v17, %v236_v10 }
  0x90   : > { %193 = vst [vmem:[#allocation2 + $0x30] sm:$0xf0] %v187_v18  ;;  %248 = vst [vmem:[#allocation2 + $0x8] sm:$0xf] %v242_v19 }
  0x92   : > { %v252_v20 = vpop.permute.xlu0 %251  ;;  %v308_v21 = vpop.permute.xlu1 %307 }
  0x93   : > { %v260_v22 = vsel %vm259_vm3, %v252_v20, %v254_v9  ;;  %v324_v44 = vld [vmem:[#allocation2] sm:$0xff]  ;;  %v924_v45 = vld [vmem:[#allocation2 + $0x48] sm:$0xff] }
  0x94   : > { %266 = vst [vmem:[#allocation2 + $0x8] sm:$0xf0] %v260_v22  ;;  %v350_v49 = vmax.f32 %v324_v44, %v924_v45 }
  0x96   : > { %v310_v23 = vpop.permute.xlu0 %309  ;;  %v200_v24 = vpop.permute.xlu1 %199 }
  0x97   : > { %v315_v25 = vsel %vm313_vm4, %v308_v21, %v310_v23 }
  0x98   : > { %321 = vst [vmem:[#allocation2 + $0x70] sm:$0xf] %v315_v25 }
  0x9a   : > { %v906_v26 = vpop.permute.xlu0 %201  ;;  %v218_v27 = vpop.permute.xlu1 %217 }
  0x9b   : > { %v207_v28 = vsel %vm205_vm5, %v200_v24, %v906_v26  ;;  %v939_v5 = vld [vmem:[#allocation2 + $0x8] sm:$0xff] }
  0x9c   : > { %213 = vst [vmem:[#allocation2 + $0x50] sm:$0xf] %v207_v28 }
  0x9e   : > { %v220_v29 = vpop.permute.xlu0 %219  ;;  %v272_v30 = vpop.permute.xlu1 %271 }
  0x9f   : > { %v225_v31 = vsel %vm223_vm6, %v218_v27, %v220_v29  ;;  %v920_v41 = vld [vmem:[#allocation2 + $0x70] sm:$0xf] }
  0xa0   : > { %231 = vst [vmem:[#allocation2 + $0x50] sm:$0xf0] %v225_v31  ;;  %v352_v46 = vsel %vm340_vm9, %v920_v41, -inf }
  0xa1   : > { %v353_v55 = vmax.f32 %v350_v49, %v352_v46 }
  0xa2   : > { %v911_v32 = vpop.permute.xlu0 %273  ;;  %v290_v33 = vpop.permute.xlu1 %289 }
  0xa3   : > { %v279_v34 = vsel %vm277_vm7, %v272_v30, %v911_v32 }
  0xa4   : > { %285 = vst [vmem:[#allocation2 + $0x10] sm:$0xf] %v279_v34 }
  0xa6   : > { %v915_v35 = vpop.permute.xlu0 %291  ;;  %v306_v36 = vpop.permute.xlu1 %305 }
  0xa7   : > { %v297_v37 = vsel %vm295_vm8, %v290_v33, %v915_v35  ;;  %v314_v38 = vsel %vm313_vm4, %v306_v36, %v308_v21  ;;  %v327_v52 = vld [vmem:[#allocation2 + $0x50] sm:$0xff] }
  0xa8   : > { %303 = vst [vmem:[#allocation2 + $0x10] sm:$0xf0] %v297_v37  ;;  %320 = vst [vmem:[#allocation2 + $0x60] sm:$0xf] %v314_v38 }
  0xaa   : > { %v185_v39 = vpop.permute.xlu0 %184  ;;  %v198_v40 = vpop.permute.xlu1 %197 }
  0xab   : > { %v189_v42 = vsel %vm186_vm2, %v183_v12, %v185_v39  ;;  %v206_v43 = vsel %vm205_vm5, %v198_v40, %v200_v24  ;;  %v944_v12 = vld [vmem:[#allocation2 + $0x30] sm:$0xff] }
  0xac   : > { %195 = vst [vmem:[#allocation2 + $0x58] sm:$0xf0] %v189_v42  ;;  %212 = vst [vmem:[#allocation2 + $0x18] sm:$0xf] %v206_v43  ;;  %v338_v15 = vmax.f32 %v944_v12, %v939_v5 }
  0xae   : > { %v216_v47 = vpop.permute.xlu0 %215  ;;  %v240_v48 = vpop.permute.xlu1 %239 }
  0xaf   : > { %v224_v50 = vsel %vm223_vm6, %v216_v47, %v218_v27  ;;  %v244_v51 = vsel %vm241_vm1, %v893_v7, %v240_v48  ;;  %v333_v53 = vld [vmem:[#allocation2 + $0x10] sm:$0xff]  ;;  %v937_v4 = vld [vmem:[#allocation2 + $0x60] sm:$0xf] }
  0xb0   : > { %230 = vst [vmem:[#allocation2 + $0x18] sm:$0xf0] %v224_v50  ;;  %250 = vst [vmem:[#allocation2 + $0x40] sm:$0xf] %v244_v51  ;;  %v351_v54 = vmax.f32 %v327_v52, %v333_v53  ;;  %v341_v14 = vsel %vm340_vm9, %v937_v4, -inf }
  0xb2   : > { %v258_v56 = vpop.permute.xlu0 %257  ;;  %v270_v57 = vpop.permute.xlu1 %269  ;;  %v354_v58 = vmax.f32 %v353_v55, %v351_v54 }
  0xb3   : > { %v262_v59 = vsel %vm259_vm3, %v897_v13, %v258_v56  ;;  %v278_v60 = vsel %vm277_vm7, %v270_v57, %v272_v30  ;;  %v325_v38 = vld [vmem:[#allocation2 + $0x58] sm:$0xff] }
  0xb4   : > { %268 = vst [vmem:[#allocation2 + $0x40] sm:$0xf0] %v262_v59  ;;  %284 = vst [vmem:[#allocation2 + $0x20] sm:$0xf] %v278_v60  ;;  %v355_v61 = vrot.slane %v354_v58, 4 }
  0xb6   : > { %v288_v62 = vpop.permute.xlu0 %287  ;;  %v312_v63 = vpop.permute.xlu1 %311  ;;  %v356_v0 = vmax.f32 %v354_v58, %v355_v61 }
  0xb7   : > { %v296_v1 = vsel %vm295_vm8, %v288_v62, %v290_v33  ;;  %v316_v2 = vsel %vm313_vm4, %v310_v23, %v312_v63  ;;  %v326_v19 = vld [vmem:[#allocation2 + $0x18] sm:$0xff]  ;;  %v342_v23 = vmax.f32 %v338_v15, %v341_v14 }
  0xb8   : > { %302 = vst [vmem:[#allocation2 + $0x20] sm:$0xf0] %v296_v1  ;;  %322 = vst [vmem:[#allocation2 + $0x28] sm:$0xf] %v316_v2  ;;  %v357_v3 = vrot.slane %v356_v0, 2 }
  0xba   : > { %v204_v7 = vpop.permute.xlu0 %203  ;;  %v222_v8 = vpop.permute.xlu1 %221  ;;  %v358_v9 = vmax.f32 %v356_v0, %v357_v3 }
  0xbb   : > { %v208_v10 = vsel %vm205_vm5, %v906_v26, %v204_v7  ;;  %v226_v11 = vsel %vm223_vm6, %v220_v29, %v222_v8  ;;  %v331_v36 = vld [vmem:[#allocation2 + $0x40] sm:$0xff] }
  0xbc   : > { %214 = vst [vmem:[#allocation2 + $0x68] sm:$0xf] %v208_v10  ;;  %232 = vst [vmem:[#allocation2 + $0x68] sm:$0xf0] %v226_v11  ;;  %v359_v13 = vrot.slane %v358_v9, 1  ;;  %v361_v42 = vmax.f32 %v325_v38, %v331_v36 }
  0xbe   : > { %v276_v16 = vpop.permute.xlu0 %275  ;;  %v294_v17 = vpop.permute.xlu1 %293  ;;  %v360_v18 = vmax.f32 %v358_v9, %v359_v13 }
  0xbf   : > { %v332_v20 = vld [vmem:[#allocation2 + $0x20] sm:$0xff]  ;;  %v280_v21 = vsel %vm277_vm7, %v911_v32, %v276_v16  ;;  %v298_v22 = vsel %vm295_vm8, %v915_v35, %v294_v17  ;;  %v337_v34 = vld [vmem:[#allocation2 + $0x28] sm:$0xf] }
  0xc0   : > { %v339_v24 = vmax.f32 %v326_v19, %v332_v20  ;;  %286 = vst [vmem:[#allocation2 + $0x38] sm:$0xf] %v280_v21  ;;  %304 = vst [vmem:[#allocation2 + $0x38] sm:$0xf0] %v298_v22  ;;  %v373_v25 = vsub.f32 %v324_v44, %v360_v18  ;;  %v376_v26 = vsub.f32 %v327_v52, %v360_v18  ;;  %v363_v40 = vsel %vm340_vm9, %v337_v34, -inf }
  0xc1   : > { %v379_v27 = vsub.f32 %v924_v45, %v360_v18  ;;  %v382_v28 = vsub.f32 %v333_v53, %v360_v18  ;;  %v385_v29 = vsub.f32 %v920_v41, %v360_v18  ;;  %v364_v47 = vmax.f32 %v361_v42, %v363_v40 }
  0xc2   : > { %v389_v30 = vmul.f32 1.442695, %v373_v25  ;;  %v395_v31 = vmul.f32 1.442695, %v376_v26  ;;  %v343_v33 = vmax.f32 %v342_v23, %v339_v24 }
  0xc3   : > { %v401_v32 = vmul.f32 1.442695, %v379_v27  ;;  %v413_v37 = vmul.f32 1.442695, %v385_v29  ;;  %v407_v39 = vmul.f32 1.442695, %v382_v28 }
  0xc4   : > { %769 = vpow2.f32 %v389_v30  ;;  %v344_v35 = vrot.slane %v343_v33, 4  ;;  %v328_v44 = vld [vmem:[#allocation2 + $0x68] sm:$0xff] }
  0xc5   : > { %771 = vpow2.f32 %v395_v31  ;;  %v450_v31 = vld [vmem:[%s989_s1] sm:$0xff] }
  0xc6   : > { %v345_v43 = vmax.f32 %v343_v33, %v344_v35  ;;  %773 = vpow2.f32 %v401_v32 }
  0xc7   : > { %v334_v45 = vld [vmem:[#allocation2 + $0x38] sm:$0xff]  ;;  %775 = vpow2.f32 %v413_v37 }
  0xc8   : > { %v362_v41 = vmax.f32 %v328_v44, %v334_v45  ;;  %v346_v46 = vrot.slane %v345_v43, 2  ;;  %777 = vpow2.f32 %v407_v39 }
  0xca   : > { %v347_v48 = vmax.f32 %v345_v43, %v346_v46  ;;  %v365_v49 = vmax.f32 %v364_v47, %v362_v41 }
  0xcc   : > { %v348_v50 = vrot.slane %v347_v48, 1  ;;  %v366_v51 = vrot.slane %v365_v49, 4 }
  0xce   : > { %v349_v52 = vmax.f32 %v347_v48, %v348_v50  ;;  %v367_v53 = vmax.f32 %v365_v49, %v366_v51 }
  0xd0   : > { %v384_v54 = vsub.f32 %v937_v4, %v349_v52  ;;  %v381_v55 = vsub.f32 %v332_v20, %v349_v52  ;;  %v378_v56 = vsub.f32 %v939_v5, %v349_v52  ;;  %v375_v57 = vsub.f32 %v326_v19, %v349_v52 }
  0xd1   : > { %v770_v58 = vpop.eup %769  ;;  %v372_v59 = vsub.f32 %v944_v12, %v349_v52  ;;  %v368_v60 = vrot.slane %v367_v53, 2 }
  0xd2   : > { %v772_v61 = vpop.eup %771  ;;  %v411_v62 = vmul.f32 1.442695, %v384_v54  ;;  %v405_v63 = vmul.f32 1.442695, %v381_v55  ;;  %v399_v0 = vmul.f32 1.442695, %v378_v56 }
  0xd3   : > { %v393_v1 = vmul.f32 1.442695, %v375_v57  ;;  %v369_v2 = vmax.f32 %v367_v53, %v368_v60  ;;  %v428_v3 = vadd.f32 %v772_v61, %v770_v58  ;;  %v774_v7 = vpop.eup %773  ;;  %v387_v8 = vmul.f32 1.442695, %v372_v59 }
  0xd4   : > { %779 = vpow2.f32 %v411_v62  ;;  %v776_v9 = vpop.eup %775 }
  0xd5   : > { %781 = vpow2.f32 %v405_v63  ;;  %v370_v4 = vrot.slane %v369_v2, 1  ;;  %v429_v10 = vadd.f32 %v774_v7, %v428_v3  ;;  %v778_v5 = vpop.eup %777  ;;  %703 = vmatprep.subr.msk.mxu0 %vm340_vm9, %v776_v9  ;;  %v431_v13 = vsel %vm340_vm9, %v776_v9, 0.0 }
  0xd6   : > { %783 = vpow2.f32 %v399_v0 }
  0xd7   : > { %785 = vpow2.f32 %v393_v1  ;;  %v371_v11 = vmax.f32 %v369_v2, %v370_v4  ;;  %v430_v12 = vadd.f32 %v778_v5, %v429_v10 }
  0xd8   : > { %787 = vpow2.f32 %v387_v8 }
  0xd9   : > { %v386_v14 = vsub.f32 %v337_v34, %v371_v11  ;;  %v383_v15 = vsub.f32 %v334_v45, %v371_v11  ;;  %v380_v16 = vsub.f32 %v331_v36, %v371_v11  ;;  %v377_v17 = vsub.f32 %v328_v44, %v371_v11 }
  0xda   : > { %v374_v18 = vsub.f32 %v325_v38, %v371_v11  ;;  %v432_v19 = vadd.f32 %v431_v13, %v430_v12 }
  0xdb   : > { %v415_v20 = vmul.f32 1.442695, %v386_v14  ;;  %v409_v21 = vmul.f32 1.442695, %v383_v15  ;;  %v403_v22 = vmul.f32 1.442695, %v380_v16 }
  0xdc   : > { %v397_v23 = vmul.f32 1.442695, %v377_v17  ;;  %v391_v24 = vmul.f32 1.442695, %v374_v18  ;;  %v433_v47 = vrot.slane %v432_v19, 4 }
  0xdd   : > { %789 = vpow2.f32 %v415_v20 }
  0xde   : > { %791 = vpow2.f32 %v409_v21  ;;  %v434_v49 = vadd.f32 %v433_v47, %v432_v19 }
  0xdf   : > { %793 = vpow2.f32 %v403_v22 }
  0xe0   : > { %795 = vpow2.f32 %v397_v23  ;;  %v435_v52 = vrot.slane %v434_v49, 2 }
  0xe1   : > { %v780_v25 = vpop.eup %779  ;;  %797 = vpow2.f32 %v391_v24 }
  0xe2   : > { %v782_v26 = vpop.eup %781  ;;  %704 = vmatpush1.msk.msra.mxu0 %vm340_vm9, %v780_v25  ;;  %v420_v37 = vsel %vm340_vm9, %v780_v25, 0.0  ;;  %v436_v55 = vadd.f32 %v435_v52, %v434_v49 }
  0xe3   : > { %v784_v27 = vpop.eup %783  ;;  %488 = vmatprep.subr.mxu0 %v778_v5 }
  0xe4   : > { %v786_v28 = vpop.eup %785  ;;  %489 = vmatpush1.msra.mxu0 %v782_v26  ;;  %v437_v57 = vrot.slane %v436_v55, 1 }
  0xe5   : > { %v788_v29 = vpop.eup %787  ;;  %490 = vmatprep.subr.mxu0 %v774_v7 }
  0xe6   : > { %491 = vmatpush1.msra.mxu0 %v784_v27  ;;  %v417_v30 = vadd.f32 %v788_v29, %v786_v28  ;;  %v438_v60 = vadd.f32 %v437_v57, %v436_v55 }
  0xe7   : > { %492 = vmatprep.subr.mxu0 %v772_v61 }
  0xe8   : > { %493 = vmatpush1.msra.mxu0 %v786_v28  ;;  %v418_v33 = vadd.f32 %v784_v27, %v417_v30 }
  0xe9   : > { %494 = vmatprep.subr.mxu0 %v770_v58 }
  0xea   : > { %v790_v34 = vpop.eup %789  ;;  %495 = vmatpush1.msra.mxu0 %v788_v29  ;;  %v419_v36 = vadd.f32 %v782_v26, %v418_v33 }
  0xeb   : > { %v792_v32 = vpop.eup %791  ;;  %718 = vmatpush3.msk.msra.mxu1 %vm340_vm9, %v790_v34  ;;  %705 = vmatmul.mubr.msk.f32.vlgmr.msra.gmra.mxu0 %vm451_vm10, %v450_v31  ;;  %v442_v45 = vsel %vm340_vm9, %v790_v34, 0.0 }
  0xec   : > { %v794_v35 = vpop.eup %793  ;;  %719 = vmatprep.subr.mxu1 %v837_v6  ;;  %v421_v38 = vadd.f32 %v420_v37, %v419_v36 }
  0xed   : > { %v796_v39 = vpop.eup %795  ;;  %720 = vmatpush3.msra.mxu1 %v792_v32 }
  0xee   : > { %v798_v40 = vpop.eup %797  ;;  %721 = vmatprep.subr.mxu1 %v837_v6  ;;  %v422_v46 = vrot.slane %v421_v38, 4 }
  0xef   : > { %722 = vmatpush3.msra.mxu1 %v794_v35  ;;  %v439_v42 = vadd.f32 %v798_v40, %v796_v39 }
  0xf0   : > { %723 = vmatprep.subr.mxu1 %v837_v6  ;;  %v423_v48 = vadd.f32 %v422_v46, %v421_v38 }
  0xf1   : > { %724 = vmatpush3.msra.mxu1 %v796_v39  ;;  %v440_v43 = vadd.f32 %v794_v35, %v439_v42 }
  0xf2   : > { %725 = vmatprep.subr.mxu1 %v837_v6  ;;  %v424_v50 = vrot.slane %v423_v48, 2 }
  0xf3   : > { %726 = vmatpush3.msra.mxu1 %v798_v40  ;;  %v441_v44 = vadd.f32 %v792_v32, %v440_v43 }
  0xf4   : > { %728 = vmatmul.mubr.msk.f32.vlgmr.msra.gmra.mxu1 %vm451_vm10, %v450_v31  ;;  %v425_v53 = vadd.f32 %v424_v50, %v423_v48 }
  0xf5   : > { %v443_v41 = vadd.f32 %v442_v45, %v441_v44 }
  0xf6   : > { %v426_v56 = vrot.slane %v425_v53, 1 }
  0xf7   : > { %v444_v51 = vrot.slane %v443_v41, 4 }
  0xf8   : > { %v427_v58 = vadd.f32 %v426_v56, %v425_v53 }
  0xf9   : > { %v445_v54 = vadd.f32 %v444_v51, %v443_v41 }
  0xfa   : > { %799 = vrcp.f32 %v427_v58 }
  0xfb   : > { %v446_v6 = vrot.slane %v445_v54, 2  ;;  %801 = vrcp.f32 %v438_v60 }
  0xfd   : > { %v447_v59 = vadd.f32 %v446_v6, %v445_v54 }
  0xff   : > { %v448_v61 = vrot.slane %v447_v59, 1 }
 0x101   : > { %v449_v62 = vadd.f32 %v448_v61, %v447_v59 }
 0x103   : > { %803 = vrcp.f32 %v449_v62 }
 0x107   : > { %v800_v63 = vpop.eup %799 }
 0x108   : > { %v802_v2 = vpop.eup %801 }
 0x110   : > { %v804_v8 = vpop.eup %803 }
 0x1ab   : > { %v530_v0 = vpop.f32.mrf.mxu0 }
 0x1ac   : > { %v608_v1 = vmul.f32 %v800_v63, %v530_v0 }
 0x1ad   : > { %v532_v3 = vpop.f32.mrf.mxu0 }
 0x1ae   : > { %611 = vst [vmem:[%s165_s30] sm:$0xff] %v608_v1  ;;  %v609_v7 = vmul.f32 %v802_v2, %v532_v3 }
 0x1b0   : > { %612 = vst [vmem:[%s165_s30 + $0x8] sm:$0xff] %v609_v7 }
 0x1b4   : > { %v601_v9 = vpop.f32.mrf.mxu1 }
 0x1b5   : > { %v610_v4 = vmul.f32 %v804_v8, %v601_v9 }
 0x1b6   : > { %v729_v10 = vpop.f32.mrf.mxu1 }
 0x1b7   : > { %613 = vst [vmem:[%s165_s30 + $0x10] sm:$0xff] %v610_v4 }
 0x1b8 PF: > { %s12_s11 = sadd.s32 1, %s827_s11   ;;  %s991_s9 = smov %s823_s10 }
 0x1b9   : > { %p9_p5 = scmp.ge.s32.totalorder %s12_s11, 4   ;;  %s992_s10 = smov %s994_s12 }
 0x1bb   :  { %11 = sbr.rel (!%p9_p5) target bundleno = 2 (0x2), region = 58 }

</bundles_post_ra>
